<compile_context>
chip_gen: v7x
topology: tpu7x:2x2x1
jax: 0.10.0
libtpu: 0.0.40
codegen_flags: <defaults>
</compile_context>

<pallas_src>
import functools

import jax
import jax.numpy as jnp
from jax import lax
from jax.experimental import pallas as pl
from jax.experimental.pallas import tpu as pltpu


def _round_up(x, m):
    return ((x + m - 1) // m) * m


def _pick_block_rows(batch, feat_dim, class_num, itemsize, block_rows=None):
    """Batch-tile rows: ~4 MiB of streamed feature per tile, bounded by the (C, bt)
    one-hot / (bt, D) gather temporaries, rounded to the dtype's sublane granule."""
    granule = max(8, 32 // max(1, itemsize))         # 8 for f32, 16 for bf16, ...
    if block_rows is None:
        bt = (4 << 20) // max(1, feat_dim * itemsize)
        bt = min(bt, max(128, (4 << 20) // max(4, 4 * class_num)))
        bt = min(max(bt, 128), 4096)
    else:
        bt = max(int(block_rows), granule)
    bt = min(bt, _round_up(batch, granule))
    return _round_up(bt, granule)


def _center_loss_kernel(tag_ref, feat_ref, caug_ref, out_ref, *, batch):
    # tag_ref:  (1, 1, bt) int32   lane-dense tag tile
    # feat_ref: (bt, D)    native-dtype feature tile (upcast to f32 in vregs)
    # caug_ref: (C, D+1)   f32 [center | 1/n] resident across all grid steps
    # out_ref:  (1, 1, 1)  f32 per-tile partial sum of d / n
    bt, D = feat_ref.shape
    C = caug_ref.shape[0]

    f = feat_ref[...].astype(jnp.float32)                       # (bt, D)
    tags = tag_ref[0]                                           # (1, bt)

    # Transposed one-hot (classes on sublanes, rows on lanes): cheap iota compare,
    # no lane->sublane relayout of the lane-dense tag tile is needed.
    onehot_t = (lax.broadcasted_iota(jnp.int32, (C, bt), 0) == tags
                ).astype(jnp.float32)                           # (C, bt)

    # Row-gather [center[tag_i], 1/n[tag_i]] with one TN matmul on the idle MXU.
    # One-hot entries are exactly 0/1, so the gather reproduces the f32 values.
    gathered = lax.dot_general(
        onehot_t, caug_ref[...],
        dimension_numbers=(((0,), (0,)), ((), ())),
        preferred_element_type=jnp.float32)                     # (bt, D + 1)

    c = gathered[:, :D]                                         # (bt, D) center rows
    # 1/n[tag] lives in the last column; extract it with an iota mask + lane reduce
    # (keeps it in the same sublane-per-row orientation as d).
    is_w_lane = lax.broadcasted_iota(jnp.int32, (bt, D + 1), 1) == D
    w = jnp.sum(jnp.where(is_w_lane, gathered, 0.0),
                axis=1, keepdims=True)                          # (bt, 1)

    diff = f - c                                                # direct form: no
    d2 = jnp.sum(diff * diff, axis=1, keepdims=True)            # cancellation issue
    d = jnp.sqrt(d2)                                            # (bt, 1)

    if batch % bt:
        # Ragged last tile: feature rows past B are unspecified (possibly NaN/Inf);
        # jnp.where selects, so garbage never reaches the accumulation.  Padded tag
        # entries are 0 and unused classes carry 1/n == 0, so w stays finite.
        row = pl.program_id(0) * bt + lax.broadcasted_iota(jnp.int32, (bt, 1), 0)
        d = jnp.where(row < batch, d, 0.0)

    out_ref[0] = jnp.sum(w * d, axis=0, keepdims=True)          # (1, 1) partial


def center_loss(tag, feature, center, lamda, *, block_rows=None):
    """tag: (B,) int, feature: (B, D) float (any), center: (C, D) -> scalar f32."""
    tag = jnp.asarray(tag).astype(jnp.int32)
    feature = jnp.asarray(feature)
    if not jnp.issubdtype(feature.dtype, jnp.floating):
        feature = feature.astype(jnp.float32)
    center = jnp.asarray(center).astype(jnp.float32)

    B, D = feature.shape
    C = center.shape[0]
    itemsize = jnp.dtype(feature.dtype).itemsize

    # ---- tiny XLA prework (global over the batch, so hoisted out of the kernel) --
    # histc over integer tags in [0, C-1] == bincount; per-class 1/n is appended as
    # one extra column of the resident center matrix and gathered in-kernel.
    counts = jnp.zeros((C,), jnp.float32).at[tag].add(1.0)              # (C,)
    inv_counts = jnp.where(counts > 0.0, 1.0 / counts, 0.0)             # (C,) finite
    center_aug = jnp.concatenate([center, inv_counts[:, None]], axis=1)  # (C, D+1)

    # ---- tiling: feature is NOT padded; only the tiny tag sidecar is -------------
    bt = _pick_block_rows(B, D, C, itemsize, block_rows)
    num_tiles = pl.cdiv(B, bt)
    Bp = num_tiles * bt
    tag_tiles = jnp.pad(tag, (0, Bp - B)).reshape(num_tiles, 1, bt)     # lane-dense

    # ---- VMEM budget: computed from actual buffers, capped per generation --------
    lane_d = _round_up(D, 128)
    lane_d1 = _round_up(D + 1, 128)
    sub_bt = _round_up(bt, 8)
    sub_c = _round_up(C, 8)
    feat_tile = sub_bt * lane_d * itemsize
    tag_tile = 8 * _round_up(bt, 128) * 4
    out_tile = 8 * 128 * 4
    caug_buf = sub_c * lane_d1 * 4
    temps = 4 * (sub_c * _round_up(bt, 128)        # one-hot^T
                 + sub_bt * lane_d1                # gather result
                 + 3 * sub_bt * lane_d             # f32 feature, diff, squares
                 + 2 * sub_bt * 128)               # (bt, 1) d / w columns
    need = 2 * (feat_tile + tag_tile + out_tile) + 2 * caug_buf + temps + (4 << 20)
    try:
        vmem_cap = int(pltpu.get_tpu_info().vmem_capacity_bytes)
    except Exception:  # noqa: BLE001 - conservative fallback (v7x-sized)
        vmem_cap = 64 << 20
    vmem_limit = int(min(max(need, 32 << 20), (vmem_cap * 3) // 4))

    kernel = functools.partial(_center_loss_kernel, batch=B)
    partials = pl.pallas_call(
        kernel,
        out_shape=jax.ShapeDtypeStruct((num_tiles, 1, 1), jnp.float32),
        grid_spec=pltpu.PrefetchScalarGridSpec(
            num_scalar_prefetch=0,
            grid=(num_tiles,),
            in_specs=[
                pl.BlockSpec((1, 1, bt), lambda i: (i, 0, 0)),   # tag tile (lane-dense)
                pl.BlockSpec((bt, D), lambda i: (i, 0)),         # feature tile (native dtype)
                pl.BlockSpec((C, D + 1), lambda i: (0, 0)),      # [center | 1/n], resident
            ],
            out_specs=pl.BlockSpec((1, 1, 1), lambda i: (i, 0, 0)),
        ),
        compiler_params=pltpu.CompilerParams(
            dimension_semantics=("parallel",),                   # per-tile outputs: no
            vmem_limit_bytes=vmem_limit,                         # cross-step state
        ),
    )(tag_tiles, feature, center_aug)

    return jnp.sum(partials) * (0.5 * float(lamda))


def center_loss_ref(tag, feature, center, lamda):
    """Pure-JAX reference mirroring the PyTorch module."""
    feature = feature.astype(jnp.float32)
    c = center[tag]
    counts = jnp.sum(
        (tag[:, None] == jnp.arange(center.shape[0])[None, :]).astype(jnp.float32),
        axis=0,
    )
    n = counts[tag]
    d = jnp.sqrt(jnp.sum((feature - c) ** 2, axis=1))
    return jnp.sum(d / n) / 2.0 * lamda


if __name__ == "__main__":
    class_num = 10
    feature_dim = 32
    lamda = 0.1

    key = jax.random.PRNGKey(0)
    k_center, k_feat, k_tag = jax.random.split(key, 3)
    center = jax.random.normal(k_center, (class_num, feature_dim), dtype=jnp.float32)

    # Case 1: multi-tile grid with a ragged last tile (exercises in-kernel masking).
    batch = 20
    feature = jax.random.normal(k_feat, (batch, feature_dim), dtype=jnp.float32)
    tag = jax.random.randint(k_tag, (batch,), 0, class_num, dtype=jnp.int32)
    loss = jax.block_until_ready(center_loss(tag, feature, center, lamda, block_rows=8))
    ref = center_loss_ref(tag, feature, center, lamda)
    assert jnp.allclose(loss, ref, rtol=1e-4, atol=1e-5), (loss, ref)

    # Case 2: default tile-size heuristic, single full tile.
    batch2 = 8
    loss2 = jax.block_until_ready(center_loss(tag[:batch2], feature[:batch2], center, lamda))
    ref2 = center_loss_ref(tag[:batch2], feature[:batch2], center, lamda)
    assert jnp.allclose(loss2, ref2, rtol=1e-4, atol=1e-5), (loss2, ref2)

    # Case 3: bf16 feature stream (kernel consumes native dtype, upcasts in vregs).
    feature_bf16 = feature.astype(jnp.bfloat16)
    loss3 = jax.block_until_ready(
        center_loss(tag, feature_bf16, center, lamda, block_rows=16))
    ref3 = center_loss_ref(tag, feature_bf16.astype(jnp.float32), center, lamda)
    assert jnp.allclose(loss3, ref3, rtol=1e-3, atol=1e-4), (loss3, ref3)

    print("KERNEL_OK")
</pallas_src>

<mosaic_0001>
module attributes {stable_mosaic.version = 11 : i64} {
  func.func @_center_loss_kernel(%arg0: i32, %arg1: memref<1x1x8xi32, #tpu.memory_space<vmem>>, %arg2: memref<8x32xf32, #tpu.memory_space<vmem>>, %arg3: memref<10x33xf32, #tpu.memory_space<vmem>>, %arg4: memref<1x1x1xf32, #tpu.memory_space<vmem>>) attributes {dimension_semantics = [#tpu.dimension_semantics<parallel>], iteration_bounds = array<i64: 3>, scalar_prefetch = 0 : i64, scratch_operands = 0 : i64, tpu.core_type = #tpu.core_type<tc>, window_params = [{transform_indices = @transform_0, window_bounds = array<i64: 1, 1, 8>}, {transform_indices = @transform_1, window_bounds = array<i64: 8, 32>}, {pipeline_mode = #tpu.pipeline_mode<synchronous>, transform_indices = @transform_2, window_bounds = array<i64: 10, 33>}, {transform_indices = @transform_3, window_bounds = array<i64: 1, 1, 1>}]} {
    %c0 = arith.constant 0 : index
    %c0_0 = arith.constant 0 : index
    %0 = vector.load %arg2[%c0, %c0_0] : memref<8x32xf32, #tpu.memory_space<vmem>>, vector<8x32xf32>
    %c0_1 = arith.constant 0 : index
    %c0_2 = arith.constant 0 : index
    %c0_3 = arith.constant 0 : index
    %1 = vector.load %arg1[%c0_1, %c0_2, %c0_3] : memref<1x1x8xi32, #tpu.memory_space<vmem>>, vector<1x1x8xi32>
    %2 = vector.shape_cast %1 : vector<1x1x8xi32> to vector<1x8xi32>
    %3 = tpu.iota {dimensions = array<i32: 0>} : vector<10x8xi32>
    %4 = vector.broadcast %2 : vector<1x8xi32> to vector<10x8xi32>
    %5 = arith.cmpi eq, %3, %4 : vector<10x8xi32>
    %6 = arith.extui %5 : vector<10x8xi1> to vector<10x8xi32>
    %7 = arith.sitofp %6 : vector<10x8xi32> to vector<10x8xf32>
    %c0_4 = arith.constant 0 : index
    %c0_5 = arith.constant 0 : index
    %8 = vector.load %arg3[%c0_4, %c0_5] : memref<10x33xf32, #tpu.memory_space<vmem>>, vector<10x33xf32>
    %cst = arith.constant dense<0.000000e+00> : vector<8x33xf32>
    %9 = tpu.matmul %7, %8, %cst {dimension_numbers = #tpu.dot_dimension_numbers<[0], [0], [1], [1], [0, 1, 1, 1], [], []>} : vector<10x8xf32>, vector<10x33xf32>, vector<8x33xf32> -> vector<8x33xf32>
    %10 = vector.extract_strided_slice %9 {offsets = [0, 0], sizes = [8, 32], strides = [1, 1]} : vector<8x33xf32> to vector<8x32xf32>
    %11 = tpu.iota {dimensions = array<i32: 1>} : vector<8x33xi32>
    %c32_i32 = arith.constant 32 : i32
    %12 = vector.broadcast %c32_i32 : i32 to vector<8x33xi32>
    %13 = arith.cmpi eq, %11, %12 : vector<8x33xi32>
    %cst_6 = arith.constant 0.000000e+00 : f32
    %14 = vector.broadcast %cst_6 : f32 to vector<8x33xf32>
    %15 = arith.select %13, %9, %14 : vector<8x33xi1>, vector<8x33xf32>
    %cst_7 = arith.constant dense<0.000000e+00> : vector<8xf32>
    %16 = vector.multi_reduction <add>, %15, %cst_7 [1] : vector<8x33xf32> to vector<8xf32>
    %17 = vector.shape_cast %16 : vector<8xf32> to vector<8x1xf32>
    %18 = arith.subf %0, %10 : vector<8x32xf32>
    %19 = arith.mulf %18, %18 : vector<8x32xf32>
    %cst_8 = arith.constant dense<0.000000e+00> : vector<8xf32>
    %20 = vector.multi_reduction <add>, %19, %cst_8 [1] : vector<8x32xf32> to vector<8xf32>
    %21 = vector.shape_cast %20 : vector<8xf32> to vector<8x1xf32>
    %22 = math.sqrt %21 : vector<8x1xf32>
    %c8_i32 = arith.constant 8 : i32
    %23 = arith.muli %arg0, %c8_i32 : i32
    %24 = tpu.iota {dimensions = array<i32: 0>} : vector<8x1xi32>
    %25 = vector.broadcast %23 : i32 to vector<8x1xi32>
    %26 = arith.addi %25, %24 : vector<8x1xi32>
    %c20_i32 = arith.constant 20 : i32
    %27 = vector.broadcast %c20_i32 : i32 to vector<8x1xi32>
    %28 = arith.cmpi slt, %26, %27 : vector<8x1xi32>
    %cst_9 = arith.constant 0.000000e+00 : f32
    %29 = vector.broadcast %cst_9 : f32 to vector<8x1xf32>
    %30 = arith.select %28, %22, %29 : vector<8x1xi1>, vector<8x1xf32>
    %31 = arith.mulf %17, %30 : vector<8x1xf32>
    %cst_10 = arith.constant dense<0.000000e+00> : vector<1xf32>
    %32 = vector.multi_reduction <add>, %31, %cst_10 [0] : vector<8x1xf32> to vector<1xf32>
    %33 = vector.shape_cast %32 : vector<1xf32> to vector<1x1xf32>
    %c0_11 = arith.constant 0 : index
    %c0_12 = arith.constant 0 : index
    %c0_13 = arith.constant 0 : index
    %34 = vector.load %arg4[%c0_11, %c0_12, %c0_13] : memref<1x1x1xf32, #tpu.memory_space<vmem>>, vector<1x1x1xf32>
    %35 = vector.shape_cast %34 : vector<1x1x1xf32> to vector<1x1xf32>
    %36 = vector.shape_cast %33 : vector<1x1xf32> to vector<1x1x1xf32>
    tpu.vector_store %arg4[%c0_11, %c0_12, %c0_13], %36 {strides = array<i32>} : memref<1x1x1xf32, #tpu.memory_space<vmem>>, vector<1x1x1xf32>,
    return
  }
  func.func @transform_0(%arg0: i32) -> (i32, i32, i32) {
    %c0_i32 = arith.constant 0 : i32
    %c0_i32_0 = arith.constant 0 : i32
    %c0_i32_1 = arith.constant 0 : i32
    return %arg0, %c0_i32, %c0_i32_0 : i32, i32, i32
  }
  func.func @transform_1(%arg0: i32) -> (i32, i32) {
    %c0_i32 = arith.constant 0 : i32
    %c0_i32_0 = arith.constant 0 : i32
    return %arg0, %c0_i32 : i32, i32
  }
  func.func @transform_2(%arg0: i32) -> (i32, i32) {
    %c0_i32 = arith.constant 0 : i32
    %c0_i32_0 = arith.constant 0 : i32
    %c0_i32_1 = arith.constant 0 : i32
    return %c0_i32, %c0_i32_0 : i32, i32
  }
  func.func @transform_3(%arg0: i32) -> (i32, i32, i32) {
    %c0_i32 = arith.constant 0 : i32
    %c0_i32_0 = arith.constant 0 : i32
    %c0_i32_1 = arith.constant 0 : i32
    return %arg0, %c0_i32, %c0_i32_0 : i32, i32, i32
  }
}

</mosaic_0001>

<bundles_post_ra>
// kernel: tpu_custom_call.1
= control target key start
LH: loop header
LB: loop body
LE: loop exit
PB: predicated region body
PF: predicated region fallthrough
CT: control target
= control target key end

     0   :  { %8 = vsyncpa [#allocation3], 0  ;;  %s918_s0 = inlined_call_operand.hbm [shape: s32[3,1,8], index: 0, kind: input, shape index: {}]   ;;  %s919_s1 = inlined_call_operand.hbm [shape: f32[20,32], index: 1, kind: input, shape index: {}]   ;;  %s920_s2 = inlined_call_operand.hbm [shape: f32[10,33], index: 2, kind: input, shape index: {}]   ;;  %s921_s3 = inlined_call_operand.vmem [shape: f32[3,1,1], index: 3, kind: output, shape index: {}]  }
   0x1   :  { %10 = vsyncpa [#allocation3 + $0x1], 0 }
   0x2   :  { %11 = vsyncpa [#allocation5], 0 }
   0x3   :  { %13 = vsyncpa [#allocation5 + $0x1], 0  ;;  %s738_s12 = smov 0   ;;  %s740_s13 = smov 0  }
   0x4   :  { %s742_s14 = smov 0   ;;  %s744_s15 = smov 0  }
   0x5 LB: > { %s757_s16 = sadd.s32 4294967295, %s707_s15   ;;  %p39_p0 = scmp.ne.s32.totalorder %s699_s13, %s695_s12  ;;  %s707_s15 = sphi %s744_s15, %s936_s15   ;;  %s703_s14 = sphi %s742_s14, %s935_s14   ;;  %s699_s13 = sphi %s740_s13, %s934_s13   ;;  %s695_s12 = sphi %s738_s12, %s933_s12  }
   0x6   : > { %p922_p1 = scmp.eq.s32.totalorder %s757_s16, 0  ;;  %p483_p2 = scmp.ge.s32.totalorder %s707_s15, 1 }
   0x7   : > { %p123_p3 = scmp.lt.s32.totalorder %s707_s15, 4  ;;  %s709_s19 = smov [#allocation6]  }
   0x8   : > { %p765_p4 = por %p922_p1, %p39_p0  ;;  %s135_s20 = sshll.u32 %s709_s19, 4  ;;  %s136_s20 = int_to_ptr.vmem [resolvable:$true] %s135_s20 }
   0x9   : > { %p769_p5 = pnand %p483_p2, %p123_p3  ;;  %s782_s22 = sadd.s32 1, %s707_s15  }
   0xa   : > { %s925_s17 = scalar_select %p765_p4, 1, 0 }
   0xb   : > { %s926_s18 = scalar_select %p769_p5, 1, 0 }
   0xc   : > { %p522_p6 = pneg %p769_p5  ;;  %s26_s23 = sadd.s32 1, %s703_s14 }
   0xd   : > { %s23_s24 = ssub.s32 %s707_s15, %s782_s22  ;;  %s577_s27 = scalar_lea.hbm %s920_s2, 256 }
   0xe   : > { %p777_p7 = pnand %p522_p6, %p922_p1  ;;  %p578_p8 = scmp.ne.s32.totalorder %s920_s2, %s577_s27 }
   0xf   : > { %p584_p12 = scmp.lt.u32.totalorder %s577_s27, %s920_s2 }
  0x10   : > { %p579_p9 = pneg %p777_p7 }
  0x12   : > { %p580_p10 = pnand %p579_p9, %p578_p8 }
  0x14   : > { %p581_p11 = pneg %p580_p10 }
  0x16   : > { %p586_p13 = pnand %p584_p12, %p581_p11 }
  0x18   : > { %589 = shalt.err (!%p586_p13)
}
  0x19   : > { %s590_s5 = scalar_lea.vmem %s136_s20, 256  ;;  %p598_p6 = scmp.lt.s32.totalorder %s136_s20, %s136_s20 }
  0x1a   : > { %p591_p0 = scmp.ne.s32.totalorder %s136_s20, %s590_s5  ;;  %p599_p1 = scmp.lt.s32.totalorder %s590_s5, %s590_s5 }
  0x1c   : > { %p593_p2 = pnand %p591_p0, %p579_p9  ;;  %p600_p4 = por %p599_p1, %p598_p6 }
  0x1e   : > { %p594_p3 = pneg %p593_p2 }
  0x20   : > { %p601_p5 = pnand %p600_p4, %p594_p3 }
  0x22   : > { %604 = shalt.err (!%p601_p5)
}
  0x23   : > { %s710_s6 = smov 128   ;;  %s711_s7 = smov 8  }
  0x24   : > { %525 = dma.hbm_to_vmem [thread:$0]  (!%p777_p7), %s920_s2, 256, %s136_s20, [#allocation5], %s710_s6, %s710_s6, %s711_s7  }
  0x25   : > { %p24_p8 = scmp.eq.s32.totalorder %s23_s24, 0  ;;  %p33_p1 = scmp.ne.s32.totalorder %s703_s14, %s699_s13 }
  0x26   : > { %p34_p4 = scmp.eq.s32.totalorder %s707_s15, 0  ;;  %p534_p5 = scmp.lt.s32.totalorder %s707_s15, 3 }
  0x27   : > { %s808_s10 = scalar_select %p24_p8, %s703_s14, %s26_s23  }
  0x28   : > { %p35_p9 = por %p34_p4, %p33_p1  ;;  %s811_s11 = sand.u32 1, %s703_s14  }
  0x29   : > { %s486_s12 = sshll.u32 %s707_s15, 4  ;;  %s152_s19 = scalar_lea.vmem [#allocation2], %s811_s11 }
  0x2a   : > { %s159_s25 = sshll.u32 %s152_s19, 4  ;;  %s818_s27 = scalar_lea.hbm %s918_s0, %s486_s12  ;;  %s820_s25 = int_to_ptr.vmem [resolvable:$true] %s159_s25 }
  0x2b   : > { %p822_p7 = pnand %p534_p5, %p35_p9  ;;  %s166_s23 = sand.u32 1, %s707_s15  }
  0x2c   : > { %s487_s24 = sshll.u32 %s811_s11, 3  ;;  %s150_s28 = scalar_lea.sflag [#allocation3], %s811_s11 }
  0x2d   : > { %s605_s29 = scalar_lea.hbm %s818_s27, 16  ;;  %p607_p11 = pneg %p822_p7 }
  0x2e   : > { %p606_p10 = scmp.ne.s32.totalorder %s818_s27, %s605_s29  ;;  %s610_s5 = scalar_lea.hbm %s918_s0, 48 }
  0x2f   : > { %p611_p0 = scmp.lt.u32.totalorder %s818_s27, %s918_s0  ;;  %p612_p2 = scmp.lt.u32.totalorder %s610_s5, %s605_s29 }
  0x30   : > { %p608_p12 = pnand %p607_p11, %p606_p10  ;;  %p614_p6 = scmp.lt.u32.totalorder %s605_s29, %s818_s27 }
  0x31   : > { %p613_p3 = por %p612_p2, %p611_p0 }
  0x32   : > { %p609_p13 = pneg %p608_p12 }
  0x33   : > { %p615_p8 = por %p614_p6, %p613_p3 }
  0x35   : > { %p616_p1 = pnand %p615_p8, %p609_p13 }
  0x37   : > { %619 = shalt.err (!%p616_p1)
}
  0x38   : > { %s620_s8 = scalar_lea.vmem %s820_s25, 16  ;;  %s712_s9 = smov [#allocation2]  }
  0x39   : > { %p621_p4 = scmp.ne.s32.totalorder %s820_s25, %s620_s8  ;;  %s625_s12 = sshll.u32 %s712_s9, 4  ;;  %s626_s12 = int_to_ptr.vmem [resolvable:$false] %s625_s12 }
  0x3a   : > { %s627_s19 = scalar_lea.vmem %s626_s12, 32  ;;  %p628_p10 = scmp.lt.s32.totalorder %s820_s25, %s626_s12 }
  0x3b   : > { %p623_p5 = pnand %p621_p4, %p607_p11  ;;  %p629_p12 = scmp.lt.s32.totalorder %s627_s19, %s620_s8 }
  0x3d   : > { %p624_p9 = pneg %p623_p5  ;;  %p630_p0 = por %p629_p12, %p628_p10 }
  0x3f   : > { %p631_p2 = pnand %p630_p0, %p624_p9 }
  0x41   : > { %634 = shalt.err (!%p631_p2)
}
  0x42   : > { %529 = dma.hbm_to_vmem [thread:$0]  (!%p822_p7), %s818_s27, 16, %s820_s25, %s150_s28  }
  0x43   : > { %s488_s21 = sshll.u32 %s707_s15, 7  ;;  %s170_s26 = scalar_lea.vmem [#allocation4], %s487_s24 }
  0x44   : > { %s177_s29 = sshll.u32 %s170_s26, 4  ;;  %s860_s5 = scalar_lea.hbm %s919_s1, %s488_s21  ;;  %s178_s29 = int_to_ptr.vmem [resolvable:$true] %s177_s29 }
  0x45   : > { %s167_s6 = scalar_lea.sflag [#allocation5], %s166_s23  ;;  %s635_s7 = scalar_lea.hbm %s860_s5, 128 }
  0x46   : > { %p636_p13 = scmp.ne.s32.totalorder %s860_s5, %s635_s7  ;;  %s640_s27 = scalar_lea.hbm %s919_s1, 384 }
  0x47   : > { %p641_p8 = scmp.lt.u32.totalorder %s860_s5, %s919_s1  ;;  %p642_p1 = scmp.lt.u32.totalorder %s640_s27, %s635_s7 }
  0x48   : > { %p638_p3 = pnand %p636_p13, %p607_p11  ;;  %p644_p5 = scmp.lt.u32.totalorder %s635_s7, %s860_s5 }
  0x49   : > { %p643_p4 = por %p642_p1, %p641_p8 }
  0x4a   : > { %p639_p6 = pneg %p638_p3 }
  0x4b   : > { %p645_p9 = por %p644_p5, %p643_p4 }
  0x4d   : > { %p646_p10 = pnand %p645_p9, %p639_p6 }
  0x4f   : > { %649 = shalt.err (!%p646_p10)
}
  0x50   : > { %s650_s15 = scalar_lea.vmem %s178_s29, 128  ;;  %s713_s23 = smov [#allocation4]  }
  0x51   : > { %p651_p12 = scmp.ne.s32.totalorder %s178_s29, %s650_s15  ;;  %s655_s8 = sshll.u32 %s713_s23, 4  ;;  %s656_s8 = int_to_ptr.vmem [resolvable:$false] %s655_s8 }
  0x52   : > { %s657_s9 = scalar_lea.vmem %s656_s8, 256  ;;  %p658_p13 = scmp.lt.s32.totalorder %s178_s29, %s656_s8 }
  0x53   : > { %p653_p0 = pnand %p651_p12, %p607_p11  ;;  %p659_p3 = scmp.lt.s32.totalorder %s657_s9, %s650_s15 }
  0x55   : > { %p654_p2 = pneg %p653_p0  ;;  %p660_p1 = por %p659_p3, %p658_p13 }
  0x57   : > { %p661_p8 = pnand %p660_p1, %p654_p2 }
  0x59   : > { %664 = shalt.err (!%p661_p8)
}
  0x5a   : > { %532 = dma.hbm_to_vmem [thread:$0]  (!%p822_p7), %s860_s5, 128, %s178_s29, %s167_s6  }
  0x5b   : > { %p929_p6 = scmp.ne.s32.totalorder %s926_s18, 0 }
  0x5c   : > { %s188_s12 = sand.u32 (!%p929_p6), 1, %s699_s13   ;;  %p930_p11 = scmp.ne.s32.totalorder (!%p929_p6), %s925_s17, 0 }
  0x5d   : > { %186 = sbr.rel (%p929_p6) target bundleno = 632 (0x278), region = 32  ;;  %s189_s19 = scalar_lea.sflag (!%p929_p6), [#allocation3], %s188_s12 }
  0x5e   : > { %s191_s21 = scalar_lea.vmem (!%p929_p6), [#allocation2], %s188_s12 }
  0x64   : > { %682 = dma.done.wait (%p930_p11), %s189_s19, 16  }
  0x65   : > { %684 = vsyncadd (%p930_p11), %s189_s19, 4294967280  ;;  %s196_s26 = sand.u32 1, %s757_s16   ;;  %s490_s30 = sshll.u32 %s188_s12, 3 }
  0x66   : > { %s197_s20 = scalar_lea.sflag [#allocation5], %s196_s26  ;;  %s200_s4 = scalar_lea.vmem [#allocation4], %s490_s30 }
  0x67   : > { %686 = dma.done.wait (%p930_p11), %s197_s20, 128  }
  0x68   : > { %688 = vsyncadd (%p930_p11), %s197_s20, 4294967168  ;;  %p931_p7 = scmp.eq.s32.totalorder %s757_s16, 0 }
  0x6a   : > { %690 = dma.done.wait (%p931_p7), [#allocation5], 256   ;;  %p932_p4 = pmov %p931_p7 }
  0x6b   : > { %v234_v0 = vlaneseq  ;;  %v714_v1 = vmov 0.0|0.0   ;;  %vm715_vm0 = vmmov 0   ;;  %v716_v3 = vmov 0.0   ;;  %v492_v5 = vld [vmem:[%s191_s21] ss:$0 sm:$0xff]  ;;  %v232_v12 = vld [vmem:[%s200_s4] sm:$0xff] }
  0x6c   : > { %692 = vsyncadd (%p932_p4), [#allocation5], 4294967040  ;;  %510 = vmatprep.subr.bf16.mxu0 %v714_v1  ;;  %507 = vmatprep.mubr.msk.f32.mxu0 %vm715_vm0, %v716_v3  ;;  %vm285_vm1 = vcmask 1041408   ;;  %vm717_vm2 = vmmov 1   ;;  %v247_v6 = vld [vmem:[#allocation6] sm:$0xff]  ;;  %vm281_vm6 = vcmask 80896  }
  0x6d   : > { %v235_v2 = vshrl.u32 %v234_v0, 7  ;;  %vm512_vm3 = vmpackc.low %vm285_vm1, %vm717_vm2  ;;  %v248_v7 = vld [vmem:[#allocation6 + $0x8] sm:$0x3]  ;;  %v360_v13 = vand.u32 127, %v234_v0  ;;  %vm369_vm7 = vcmask 261120   ;;  %vm363_vm9 = vcmask 269312  }
  0x6e   : > { %v511_v8 = vpack.c.bf16 %v248_v7, %v247_v6  ;;  %s497_s17 = sshll.u32 %s757_s16, 3  ;;  %p229_p5 = scmp.lt.s32.totalorder %s757_s16, 2  ;;  %vm392_vm13 = vcmask 0  }
  0x6f   : > { %v236_v4 = vadd.s32 8, %v235_v2  ;;  %vm241_vm4 = vcmp.eq.s32.totalorder %v235_v2, %v492_v5  ;;  %vm361_vm8 = vcmp.eq.s32.totalorder %v360_v13, 32  ;;  %v381_v22 = vstv %s497_s17 }
  0x70   : > { %v493_v9 = vsel %vm241_vm4, 1.0, %v716_v3  ;;  %513 = vmatpush3.bf16.msk.msra.mxu0 %vm512_vm3, %v511_v8  ;;  %v382_v23 = vadd.s32 %v381_v22, %v235_v2  ;;  %s938_s16 = smov (!%p229_p5, %s757_s16), 2 }
  0x71   : > { %vm242_vm5 = vcmp.eq.s32.totalorder %v236_v4, %v492_v5  ;;  %249 = vxpose.xlu0.b32.start [1/2] (short) (narrow) %v493_v9, 8  ;;  %s231_s5 = scalar_lea.vmem %s921_s3, %s938_s16 }
  0x72   : > { %v494_v10 = vsel %vm242_vm5, 1.0, %v716_v3  ;;  %vm383_vm11 = vcmp.lt.s32.totalorder %v382_v23, 20 }
  0x75   : > { %250 = vxpose.xlu0.b32.end [2/2] (short) (narrow) %v494_v10, 8 }
  0xf1   : > { %v265_v11 = vpop.trf.xlu0 }
  0xf2   : > { %508 = vmatmul.mubr.msk.f32.vlgmr.msra.gmra.mrb[0].mxu0 %vm281_vm6, %v265_v11 }
 0x1c5   : > { %v355_v14 = vpop.f32.mrb[0].mxu0 }
 0x1c6   : > { %v367_v15 = vsub.f32 %v232_v12, %v355_v14  ;;  %v509_v16 = vpop.f32.mrb[1].mxu0  ;;  %v362_v19 = vsel %vm361_vm8, %v355_v14, 0.0 }
 0x1c7   : > { %v364_v20 = vsel %vm363_vm9, %v362_v19, 0.0 }
 0x1c8   : > { %v368_v17 = vmul.f32 %v367_v15, %v367_v15 }
 0x1ca   : > { %v370_v18 = vsel %vm369_vm7, %v368_v17, 0.0 }
 0x1cb   : > { %371 = vadd.xlane.f32.xlu1 %v370_v18 }
 0x1cf   : > { %365 = vadd.xlane.f32.xlu1 %v364_v20 }
 0x258   : > { %v372_v21 = vpop.xlane.xlu1 %371 }
 0x259   : > { %575 = vrsqrt.f32 %v372_v21  ;;  %vm375_vm10 = vcmp.eq.f32.partialorder %v372_v21, inf  ;;  %v378_v26 = vand.u32 2147483648, %v372_v21  ;;  %vm377_vm12 = vcmp.eq.f32.partialorder %v372_v21, 0.0 }
 0x25c   : > { %v366_v30 = vpop.xlane.xlu1 %365 }
 0x263   : > { %v576_v24 = vpop.eup %575 }
 0x264   : > { %v374_v25 = vmul.f32 %v576_v24, %v372_v21 }
 0x266   : > { %v376_v27 = vsel %vm375_vm10, %v372_v21, %v374_v25 }
 0x267   : > { %v379_v28 = vsel %vm377_vm12, %v378_v26, %v376_v27 }
 0x268   : > { %v384_v29 = vsel %vm383_vm11, %v379_v28, 0.0 }
 0x269   : > { %v385_v31 = vmul.f32 %v384_v29, %v366_v30 }
 0x26b   : > { %v386_v32 = vrot.slane %v385_v31, 4 }
 0x26d   : > { %v387_v33 = vadd.f32 %v386_v32, %v385_v31 }
 0x26f   : > { %v388_v34 = vrot.slane %v387_v33, 2 }
 0x271   : > { %v389_v35 = vadd.f32 %v388_v34, %v387_v33 }
 0x273   : > { %v390_v36 = vrot.slane %v389_v35, 1 }
 0x275   : > { %v391_v37 = vadd.f32 %v390_v36, %v389_v35 }
 0x277   : > { %393 = vst.msk [vmem:[%s231_s5] sm:$0x1] %vm392_vm13, %v391_v37 }
 0x278 PF: > { %p16_p9 = scmp.ge.s32.totalorder %s782_s22, 5   ;;  %s933_s12 = smov %s699_s13 }
 0x279   : > { %s934_s13 = smov %s703_s14  ;;  %s935_s14 = smov %s808_s10 }
 0x27a   : > { %s936_s15 = smov %s782_s22  ;;  %18 = sbr.rel (!%p16_p9) target bundleno = 5 (0x5), region = 89 }
 0x281   :  { %411 = vsyncpa [#allocation3], 1 }
 0x282   :  { %413 = vsyncpa [#allocation3 + $0x1], 1 }
 0x283   :  { %414 = vsyncpa [#allocation5], 1 }
 0x284   :  { %416 = vsyncpa [#allocation5 + $0x1], 1 }

</bundles_post_ra>
